<compile_context>
chip_gen: v7x
topology: tpu7x:2x2x1
jax: 0.10.0
libtpu: 0.0.40
codegen_flags: <defaults>
</compile_context>

<pallas_src>
import functools

import jax
import jax.numpy as jnp
from jax import lax
from jax.experimental import pallas as pl
from jax.experimental.pallas import tpu as pltpu

_EPS = 1e-5                              # nn.BatchNorm2d default eps
_MM_ROW_TILE = 256                       # row tile for the 1x1-conv (matmul) kernels
_EW_ROW_TILE = 256                       # row tile for the final elementwise kernel
_VMEM_LIMIT_BYTES = 48 * 1024 * 1024     # explicit; headroom under v7x's 64 MiB VMEM


def _pick_tile(total, target):
    """Largest divisor of `total` that is <= target and sublane-friendly (8-mult or full)."""
    for t in range(min(target, total), 0, -1):
        if total % t == 0 and (t % 8 == 0 or t == total):
            return t
    return total


def _compiler_params():
    return pltpu.CompilerParams(
        dimension_semantics=("parallel",),
        vmem_limit_bytes=_VMEM_LIMIT_BYTES)


# --------------------------------------------------------------------------------------
# Kernels
# --------------------------------------------------------------------------------------
def _matmul_stats_kernel(x_ref, w_ref, s_ref, t_ref, o_ref, st_ref, *, pre_act, bf16):
    """Row-tile of a 1x1 conv (matmul), optionally with fused pre-BN-affine + ReLU6.

    Emits per-tile partial [sum, sum_of_squares] of the matmul output so the next
    BatchNorm's batch statistics can be finalized cheaply in XLA.
    """
    x = x_ref[...]                                            # (tm, K) f32
    if pre_act:                                               # BN affine + ReLU6 in f32
        x = jnp.clip(x * s_ref[...] + t_ref[...], 0.0, 6.0)
    w = w_ref[...]
    if bf16:                                                  # MXU-native operands
        x = x.astype(jnp.bfloat16)
        w = w.astype(jnp.bfloat16)
    y = jnp.dot(x, w, preferred_element_type=jnp.float32)     # (tm, N) f32 accum
    o_ref[...] = y
    st_ref[0:1, :] = jnp.sum(y, axis=0, keepdims=True)        # fused one-pass stats
    st_ref[1:2, :] = jnp.sum(y * y, axis=0, keepdims=True)


def _dw_stats_kernel(h_ref, s_ref, t_ref, w_ref, d_ref, st_ref, pad_ref,
                     *, H, W, C, Ho, Wo, stride, pre_act):
    """Per-image fused [BN-affine + ReLU6] -> 3x3 depthwise conv (pad=1) + BN stats."""
    h = h_ref[...]                                            # (H, W, C) f32
    if pre_act:
        h = jnp.clip(h * s_ref[...] + t_ref[...], 0.0, 6.0)

    # Zero only the 1-pixel halo of the padded buffer, then fill the interior.
    pad_ref[0:1, :, :] = jnp.zeros((1, W + 2, C), jnp.float32)
    pad_ref[H + 1:H + 2, :, :] = jnp.zeros((1, W + 2, C), jnp.float32)
    pad_ref[:, 0:1, :] = jnp.zeros((H + 2, 1, C), jnp.float32)
    pad_ref[:, W + 1:W + 2, :] = jnp.zeros((H + 2, 1, C), jnp.float32)
    pad_ref[1:H + 1, 1:W + 1, :] = h

    # 9 shifted multiply-accumulates with contiguous (stride-1) windows and
    # direct static tap indexing (no pl.ds / reshape chains).
    acc = None
    for dy in range(3):
        for dx in range(3):
            k = dy * 3 + dx
            tap = w_ref[k:k + 1, :]                           # (1, C)
            term = pad_ref[dy:dy + H, dx:dx + W, :] * tap
            acc = term if acc is None else acc + term

    if stride == 1:
        d = acc
    else:
        # TODO(synk): stride-2 still needs one strided sublane read (vs. nine before);
        # an even/odd lane repack of W would remove it entirely.
        pad_ref[0:H, 0:W, :] = acc
        d = pad_ref[pl.ds(0, Ho, stride), pl.ds(0, Wo, stride), :]

    d_ref[...] = d
    d2 = d.reshape(Ho * Wo, C)
    st_ref[0:1, :] = jnp.sum(d2, axis=0, keepdims=True)
    st_ref[1:2, :] = jnp.sum(d2 * d2, axis=0, keepdims=True)


def _affine_kernel(p_ref, s_ref, t_ref, o_ref):
    o_ref[...] = p_ref[...] * s_ref[...] + t_ref[...]


def _affine_residual_kernel(p_ref, s_ref, t_ref, r_ref, o_ref):
    o_ref[...] = p_ref[...] * s_ref[...] + t_ref[...] + r_ref[...]


# --------------------------------------------------------------------------------------
# pallas_call wrappers
# --------------------------------------------------------------------------------------
def _conv1x1(x2d, w, scale, shift, *, pre_act, bf16):
    M, K = x2d.shape
    Nc = w.shape[1]
    tm = _pick_tile(M, _MM_ROW_TILE)
    gm = M // tm
    kernel = functools.partial(_matmul_stats_kernel, pre_act=pre_act, bf16=bf16)
    return pl.pallas_call(
        kernel,
        grid=(gm,),
        in_specs=[
            pl.BlockSpec((tm, K), lambda i: (i, 0)),
            pl.BlockSpec((K, Nc), lambda i: (0, 0)),
            pl.BlockSpec((1, K), lambda i: (0, 0)),
            pl.BlockSpec((1, K), lambda i: (0, 0)),
        ],
        out_specs=[
            pl.BlockSpec((tm, Nc), lambda i: (i, 0)),
            pl.BlockSpec((None, 2, Nc), lambda i: (i, 0, 0)),
        ],
        out_shape=[
            jax.ShapeDtypeStruct((M, Nc), jnp.float32),
            jax.ShapeDtypeStruct((gm, 2, Nc), jnp.float32),
        ],
        compiler_params=_compiler_params(),
    )(x2d, w, scale, shift)


def _depthwise3x3(h4d, scale, shift, wdw, *, stride, pre_act):
    N, H, W, C = h4d.shape
    Ho = (H - 1) // stride + 1
    Wo = (W - 1) // stride + 1
    kernel = functools.partial(_dw_stats_kernel, H=H, W=W, C=C, Ho=Ho, Wo=Wo,
                               stride=stride, pre_act=pre_act)
    # TODO(synk): for very large images, tile H with a 1-row halo instead of one whole
    # image per grid step (current per-image tile fits comfortably for MobileNetV2 sizes).
    return pl.pallas_call(
        kernel,
        grid=(N,),
        in_specs=[
            pl.BlockSpec((None, H, W, C), lambda n: (n, 0, 0, 0)),
            pl.BlockSpec((1, C), lambda n: (0, 0)),
            pl.BlockSpec((1, C), lambda n: (0, 0)),
            pl.BlockSpec((9, C), lambda n: (0, 0)),
        ],
        out_specs=[
            pl.BlockSpec((None, Ho, Wo, C), lambda n: (n, 0, 0, 0)),
            pl.BlockSpec((None, 2, C), lambda n: (n, 0, 0)),
        ],
        out_shape=[
            jax.ShapeDtypeStruct((N, Ho, Wo, C), jnp.float32),
            jax.ShapeDtypeStruct((N, 2, C), jnp.float32),
        ],
        scratch_shapes=[pltpu.VMEM((H + 2, W + 2, C), jnp.float32)],
        compiler_params=_compiler_params(),
    )(h4d, scale, shift, wdw)


def _affine(p2, scale_row, shift_row, residual=None):
    R, L = p2.shape
    tr = _pick_tile(R, _EW_ROW_TILE)
    gr = R // tr
    args = [p2, scale_row, shift_row]
    in_specs = [
        pl.BlockSpec((tr, L), lambda i: (i, 0)),
        pl.BlockSpec((1, L), lambda i: (0, 0)),
        pl.BlockSpec((1, L), lambda i: (0, 0)),
    ]
    if residual is None:
        kernel = _affine_kernel
    else:
        kernel = _affine_residual_kernel
        args.append(residual)
        in_specs.append(pl.BlockSpec((tr, L), lambda i: (i, 0)))
    return pl.pallas_call(
        kernel,
        grid=(gr,),
        in_specs=in_specs,
        out_specs=pl.BlockSpec((tr, L), lambda i: (i, 0)),
        out_shape=jax.ShapeDtypeStruct((R, L), jnp.float32),
        compiler_params=_compiler_params(),
    )(*args)


def _bn_scale_shift(partials, count, gamma, beta):
    """Finalize training-mode BatchNorm from per-tile [sum; sum_sq] partials (tiny XLA op)."""
    s = jnp.sum(partials, axis=0)                  # (2, C)
    mean = s[0] / count
    var = s[1] / count - mean * mean               # E[x^2] - E[x]^2 (eps absorbs the tiny diff)
    scale = gamma.reshape(-1) * lax.rsqrt(var + _EPS)
    shift = beta.reshape(-1) - mean * scale
    return scale.reshape(1, -1), shift.reshape(1, -1)


# --------------------------------------------------------------------------------------
# Public forward + parameters
# --------------------------------------------------------------------------------------
def init_params(key, in_, out, expand_ratio):
    """Deterministic synthetic parameters matching the PyTorch module's shapes."""
    hidden = int(in_ * expand_ratio)
    k1, k2, k3 = jax.random.split(key, 3)
    return dict(
        # nn.Conv2d(in_, hidden, 1) weight (hidden, in_, 1, 1) stored transposed (in_, hidden)
        w1=jax.random.normal(k1, (in_, hidden), jnp.float32) * 0.1,
        g1=jnp.ones((1, hidden), jnp.float32), b1=jnp.zeros((1, hidden), jnp.float32),
        # depthwise nn.Conv2d(hidden, hidden, 3, groups=hidden) weight (hidden,1,3,3)
        # stored as (9, hidden): row = dy*3+dx, per-channel tap value
        wdw=jax.random.normal(k2, (9, hidden), jnp.float32) * 0.1,
        g2=jnp.ones((1, hidden), jnp.float32), b2=jnp.zeros((1, hidden), jnp.float32),
        # nn.Conv2d(hidden, out, 1) weight (out, hidden, 1, 1) stored transposed (hidden, out)
        w3=jax.random.normal(k3, (hidden, out), jnp.float32) * 0.1,
        g3=jnp.ones((1, out), jnp.float32), b3=jnp.zeros((1, out), jnp.float32),
    )


def bottleneck_forward(x_nchw, params, *, stride, expand_ratio, matmul_bf16=True):
    N, Cin, H, W = x_nchw.shape
    hidden = int(Cin * expand_ratio)
    Cout = params["w3"].shape[1]
    res = (Cin == Cout) and (stride == 1)
    Ho = (H - 1) // stride + 1
    Wo = (W - 1) // stride + 1
    expand = expand_ratio != 1

    # TODO(synk): production callers should pass/receive NHWC directly; these transposes
    # exist only to match the PyTorch NCHW interface.
    x_nhwc = jnp.transpose(x_nchw, (0, 2, 3, 1)).astype(jnp.float32)

    if expand:
        # 1x1 expand conv (+ fused stats for BN1)
        ones = jnp.ones((1, Cin), jnp.float32)
        zeros = jnp.zeros((1, Cin), jnp.float32)
        h2d, st1 = _conv1x1(x_nhwc.reshape(N * H * W, Cin), params["w1"],
                            ones, zeros, pre_act=False, bf16=matmul_bf16)
        sc1, sh1 = _bn_scale_shift(st1, N * H * W, params["g1"], params["b1"])
        h4d = h2d.reshape(N, H, W, hidden)
        pre_act_dw = True
    else:
        h4d = x_nhwc
        sc1 = jnp.ones((1, hidden), jnp.float32)
        sh1 = jnp.zeros((1, hidden), jnp.float32)
        pre_act_dw = False

    # [BN1 + ReLU6] -> 3x3 depthwise conv (+ fused stats for BN2)
    d4d, st2 = _depthwise3x3(h4d, sc1, sh1, params["wdw"],
                             stride=stride, pre_act=pre_act_dw)
    sc2, sh2 = _bn_scale_shift(st2, N * Ho * Wo, params["g2"], params["b2"])

    # [BN2 + ReLU6] -> 1x1 project conv (+ fused stats for BN3)
    p2d, st3 = _conv1x1(d4d.reshape(N * Ho * Wo, hidden), params["w3"],
                        sc2, sh2, pre_act=True, bf16=matmul_bf16)
    sc3, sh3 = _bn_scale_shift(st3, N * Ho * Wo, params["g3"], params["b3"])

    # BN3 (+ residual) with a lane-dense (N*Ho, Wo*Cout) output layout.
    R, L = N * Ho, Wo * Cout
    p_fold = p2d.reshape(R, L)
    sc3_row = jnp.tile(sc3, (1, Wo))     # per-channel affine tiled along W -> lane-dense
    sh3_row = jnp.tile(sh3, (1, Wo))
    res_fold = x_nhwc.reshape(R, L) if res else None
    out_fold = _affine(p_fold, sc3_row, sh3_row, res_fold)

    out_nhwc = out_fold.reshape(N, Ho, Wo, Cout)
    return jnp.transpose(out_nhwc, (0, 3, 1, 2))  # back to NCHW


# --------------------------------------------------------------------------------------
# Pure-JAX/XLA reference (training-mode BN, exact f32) for correctness checking
# --------------------------------------------------------------------------------------
def _reference(x_nchw, params, *, stride, expand_ratio):
    N, Cin, H, W = x_nchw.shape
    hidden = int(Cin * expand_ratio)
    Cout = params["w3"].shape[1]

    def bn(y, g, b):
        mean = jnp.mean(y, axis=(0, 1, 2), keepdims=True)
        var = jnp.mean((y - mean) ** 2, axis=(0, 1, 2), keepdims=True)
        return (y - mean) / jnp.sqrt(var + _EPS) * g.reshape(1, 1, 1, -1) + b.reshape(1, 1, 1, -1)

    x = jnp.transpose(x_nchw, (0, 2, 3, 1))
    h = x
    if expand_ratio != 1:
        h = jnp.einsum("nhwc,cd->nhwd", x, params["w1"])
        h = jnp.clip(bn(h, params["g1"], params["b1"]), 0.0, 6.0)
    wdw = params["wdw"].reshape(3, 3, 1, hidden)  # HWIO, feature_group_count=hidden
    dw = lax.conv_general_dilated(
        h, wdw, window_strides=(stride, stride), padding=((1, 1), (1, 1)),
        dimension_numbers=("NHWC", "HWIO", "NHWC"), feature_group_count=hidden)
    dw = jnp.clip(bn(dw, params["g2"], params["b2"]), 0.0, 6.0)
    p = jnp.einsum("nhwc,cd->nhwd", dw, params["w3"])
    p = bn(p, params["g3"], params["b3"])
    if Cin == Cout and stride == 1:
        p = p + x
    return jnp.transpose(p, (0, 3, 1, 2))


if __name__ == "__main__":
    # Bottleneck(in_=4, out=4, stride=1, expand_ratio=2) -> hidden=8, residual path
    in_, out_, stride, expand_ratio = 4, 4, 1, 2
    N, H, W = 2, 16, 16

    key = jax.random.PRNGKey(0)
    kx, kp = jax.random.split(key)
    x = jax.random.normal(kx, (N, in_, H, W), jnp.float32)     # NCHW, like PyTorch
    params = init_params(kp, in_, out_, expand_ratio)

    y_ref = jax.block_until_ready(
        _reference(x, params, stride=stride, expand_ratio=expand_ratio))

    # Strict f32 path (exact PyTorch-module semantics).
    y32 = jax.block_until_ready(
        bottleneck_forward(x, params, stride=stride, expand_ratio=expand_ratio,
                           matmul_bf16=False))
    assert y32.shape == (N, out_, H, W), y32.shape
    assert jnp.allclose(y32, y_ref, atol=2e-3, rtol=2e-3), float(jnp.max(jnp.abs(y32 - y_ref)))

    # Default fast path: bf16 MXU operands, f32 accumulation / BN math.
    y16 = jax.block_until_ready(
        bottleneck_forward(x, params, stride=stride, expand_ratio=expand_ratio))
    assert jnp.allclose(y16, y_ref, atol=5e-2, rtol=5e-2), float(jnp.max(jnp.abs(y16 - y_ref)))

    # expand_ratio == 1 variant (no expand conv), f32 check.
    params1 = init_params(jax.random.PRNGKey(1), in_, out_, 1)
    y1 = jax.block_until_ready(
        bottleneck_forward(x, params1, stride=1, expand_ratio=1, matmul_bf16=False))
    y1_ref = _reference(x, params1, stride=1, expand_ratio=1)
    assert jnp.allclose(y1, y1_ref, atol=2e-3, rtol=2e-3), float(jnp.max(jnp.abs(y1 - y1_ref)))

    print("KERNEL_OK")
</pallas_src>

<mosaic_0001>
module attributes {stable_mosaic.version = 11 : i64} {
  func.func @_matmul_stats_kernel(%arg0: i32, %arg1: memref<256x4xf32, #tpu.memory_space<vmem>>, %arg2: memref<4x8xf32, #tpu.memory_space<vmem>>, %arg3: memref<1x4xf32, #tpu.memory_space<vmem>>, %arg4: memref<1x4xf32, #tpu.memory_space<vmem>>, %arg5: memref<256x8xf32, #tpu.memory_space<vmem>>, %arg6: memref<1x2x8xf32, #tpu.memory_space<vmem>>) attributes {dimension_semantics = [#tpu.dimension_semantics<parallel>], iteration_bounds = array<i64: 2>, scalar_prefetch = 0 : i64, scratch_operands = 0 : i64, tpu.core_type = #tpu.core_type<tc>, window_params = [{transform_indices = @transform_0, window_bounds = array<i64: 256, 4>}, {pipeline_mode = #tpu.pipeline_mode<synchronous>, transform_indices = @transform_1, window_bounds = array<i64: 4, 8>}, {pipeline_mode = #tpu.pipeline_mode<synchronous>, transform_indices = @transform_2, window_bounds = array<i64: 1, 4>}, {pipeline_mode = #tpu.pipeline_mode<synchronous>, transform_indices = @transform_3, window_bounds = array<i64: 1, 4>}, {transform_indices = @transform_4, window_bounds = array<i64: 256, 8>}, {transform_indices = @transform_5, window_bounds = array<i64: 1, 2, 8>}]} {
    %c0 = arith.constant 0 : index
    %c0_0 = arith.constant 0 : index
    %0 = vector.load %arg1[%c0, %c0_0] : memref<256x4xf32, #tpu.memory_space<vmem>>, vector<256x4xf32>
    %c0_1 = arith.constant 0 : index
    %c0_2 = arith.constant 0 : index
    %1 = vector.load %arg2[%c0_1, %c0_2] : memref<4x8xf32, #tpu.memory_space<vmem>>, vector<4x8xf32>
    %cst = arith.constant dense<0.000000e+00> : vector<256x8xf32>
    %2 = tpu.matmul %0, %1, %cst {dimension_numbers = #tpu.dot_dimension_numbers<[1], [0], [0], [1], [0, 0, 1, 1], [], []>} : vector<256x4xf32>, vector<4x8xf32>, vector<256x8xf32> -> vector<256x8xf32>
    %c0_3 = arith.constant 0 : index
    %c0_4 = arith.constant 0 : index
    %3 = vector.load %arg5[%c0_3, %c0_4] : memref<256x8xf32, #tpu.memory_space<vmem>>, vector<256x8xf32>
    tpu.vector_store %arg5[%c0_3, %c0_4], %2 {strides = array<i32>} : memref<256x8xf32, #tpu.memory_space<vmem>>, vector<256x8xf32>,
    %cst_5 = arith.constant dense<0.000000e+00> : vector<8xf32>
    %4 = vector.multi_reduction <add>, %2, %cst_5 [0] : vector<256x8xf32> to vector<8xf32>
    %5 = vector.shape_cast %4 : vector<8xf32> to vector<1x8xf32>
    %c0_6 = arith.constant 0 : index
    %c0_7 = arith.constant 0 : index
    %c0_8 = arith.constant 0 : index
    %6 = vector.load %arg6[%c0_6, %c0_7, %c0_8] : memref<1x2x8xf32, #tpu.memory_space<vmem>>, vector<1x1x8xf32>
    %7 = vector.shape_cast %6 : vector<1x1x8xf32> to vector<1x8xf32>
    %8 = vector.shape_cast %5 : vector<1x8xf32> to vector<1x1x8xf32>
    tpu.vector_store %arg6[%c0_6, %c0_7, %c0_8], %8 {strides = array<i32>} : memref<1x2x8xf32, #tpu.memory_space<vmem>>, vector<1x1x8xf32>,
    %9 = arith.mulf %2, %2 : vector<256x8xf32>
    %cst_9 = arith.constant dense<0.000000e+00> : vector<8xf32>
    %10 = vector.multi_reduction <add>, %9, %cst_9 [0] : vector<256x8xf32> to vector<8xf32>
    %11 = vector.shape_cast %10 : vector<8xf32> to vector<1x8xf32>
    %c0_10 = arith.constant 0 : index
    %c1 = arith.constant 1 : index
    %c0_11 = arith.constant 0 : index
    %12 = vector.load %arg6[%c0_10, %c1, %c0_11] : memref<1x2x8xf32, #tpu.memory_space<vmem>>, vector<1x1x8xf32>
    %13 = vector.shape_cast %12 : vector<1x1x8xf32> to vector<1x8xf32>
    %14 = vector.shape_cast %11 : vector<1x8xf32> to vector<1x1x8xf32>
    tpu.vector_store %arg6[%c0_10, %c1, %c0_11], %14 {strides = array<i32>} : memref<1x2x8xf32, #tpu.memory_space<vmem>>, vector<1x1x8xf32>,
    return
  }
  func.func @transform_0(%arg0: i32) -> (i32, i32) {
    %c0_i32 = arith.constant 0 : i32
    %c0_i32_0 = arith.constant 0 : i32
    return %arg0, %c0_i32 : i32, i32
  }
  func.func @transform_1(%arg0: i32) -> (i32, i32) {
    %c0_i32 = arith.constant 0 : i32
    %c0_i32_0 = arith.constant 0 : i32
    %c0_i32_1 = arith.constant 0 : i32
    return %c0_i32, %c0_i32_0 : i32, i32
  }
  func.func @transform_2(%arg0: i32) -> (i32, i32) {
    %c0_i32 = arith.constant 0 : i32
    %c0_i32_0 = arith.constant 0 : i32
    %c0_i32_1 = arith.constant 0 : i32
    return %c0_i32, %c0_i32_0 : i32, i32
  }
  func.func @transform_3(%arg0: i32) -> (i32, i32) {
    %c0_i32 = arith.constant 0 : i32
    %c0_i32_0 = arith.constant 0 : i32
    %c0_i32_1 = arith.constant 0 : i32
    return %c0_i32, %c0_i32_0 : i32, i32
  }
  func.func @transform_4(%arg0: i32) -> (i32, i32) {
    %c0_i32 = arith.constant 0 : i32
    %c0_i32_0 = arith.constant 0 : i32
    return %arg0, %c0_i32 : i32, i32
  }
  func.func @transform_5(%arg0: i32) -> (i32, i32, i32) {
    %c0_i32 = arith.constant 0 : i32
    %c0_i32_0 = arith.constant 0 : i32
    %c0_i32_1 = arith.constant 0 : i32
    return %arg0, %c0_i32, %c0_i32_0 : i32, i32, i32
  }
}

</mosaic_0001>

<bundles_post_ra>
// kernel: tpu_custom_call.1
= control target key start
LH: loop header
LB: loop body
LE: loop exit
PB: predicated region body
PF: predicated region fallthrough
CT: control target
= control target key end

     0   :  { %11 = vsyncpa [#allocation3], 0  ;;  %s1583_s0 = inlined_call_operand.vmem [shape: f32[512,4], index: 0, kind: input, shape index: {}]   ;;  %s1584_s1 = inlined_call_operand.vmem [shape: f32[4,8], index: 1, kind: input, shape index: {}]   ;;  %s1585_s2 = inlined_call_operand.vmem [shape: f32[1,4], index: 2, kind: input, shape index: {}]   ;;  %s1586_s3 = inlined_call_operand.vmem [shape: f32[1,4], index: 3, kind: input, shape index: {}]   ;;  %s1587_s4 = inlined_call_operand.vmem [shape: f32[512,8], index: 4, kind: output, shape index: {0}]   ;;  %s1588_s5 = inlined_call_operand.hbm [shape: f32[2,2,8], index: 5, kind: output, shape index: {1}]  }
   0x1   :  { %13 = vsyncpa [#allocation3 + $0x1], 0  ;;  %s1176_s18 = smov 0   ;;  %s1178_s19 = smov 0  }
   0x2   :  { %s1180_s20 = smov 0   ;;  %s1182_s21 = smov 0  }
   0x3 LB: > { %s910_s2 = sadd.s32 4294967295, %s1143_s21   ;;  %s911_s3 = sadd.s32 4294967294, %s1143_s21   ;;  %s1143_s21 = sphi %s1182_s21, %s1594_s21   ;;  %s1139_s20 = sphi %s1180_s20, %s1593_s20   ;;  %s1135_s19 = sphi %s1178_s19, %s1592_s19   ;;  %s1131_s18 = sphi %s1176_s18, %s1591_s18  }
   0x4   : > { %s1199_s22 = sadd.s32 1, %s1143_s21   ;;  %s141_s23 = sadd.s32 1, %s1139_s20 }
   0x5   : > { %s138_s24 = ssub.s32 %s1143_s21, %s1199_s22  ;;  %p151_p0 = scmp.ne.s32.totalorder %s1139_s20, %s1135_s19 }
   0x6   : > { %p139_p1 = scmp.eq.s32.totalorder %s138_s24, 0  ;;  %p152_p2 = scmp.eq.s32.totalorder %s910_s2, 1 }
   0x7   : > { %p157_p3 = scmp.ne.s32.totalorder %s1135_s19, %s1131_s18  ;;  %p158_p4 = scmp.eq.s32.totalorder %s911_s3, 1 }
   0x8   : > { %s1209_s25 = scalar_select %p139_p1, %s1139_s20, %s141_s23  }
   0x9   : > { %p1211_p5 = por %p152_p2, %p151_p0  ;;  %p1215_p6 = por %p158_p4, %p157_p3 }
   0xa   : > { %p914_p7 = scmp.ge.s32.totalorder %s1143_s21, 1  ;;  %p194_p8 = scmp.lt.s32.totalorder %s1143_s21, 3 }
   0xc   : > { %p195_p9 = pnand %p914_p7, %p194_p8 }
   0xd   : > { %v271_v0 = vld [vmem:[%s1584_s1] sm:$0xf] (!%p195_p9)  ;;  %vm369_vm0 = vcmask (!%p195_p9), 1043456   ;;  %s1224_s30 = sshll.u32 (!%p195_p9), %s910_s2, 5  ;;  %vm272_vm1 = vcmask (!%p195_p9), 31744   ;;  %vm598_vm2 = vcmask (!%p195_p9), 64512  }
   0xe   : > { %198 = sbr.rel (%p195_p9) target bundleno = 333 (0x14d), region = 36  ;;  %990 = vmatprep.subr.msk.mxu0 (!%p195_p9), %vm369_vm0, %v271_v0  ;;  %p228_p10 = scmp.lt.s32.totalorder (!%p195_p9), %s1224_s30, 63  ;;  %1040 = vmatprep.subr.msk.mxu1 (!%p195_p9), %vm369_vm0, %v271_v0  ;;  %vm700_vm3 = vcmask (!%p195_p9), 57344  }
   0xf   : > { %991 = vmatpush3.msk.msra.mxu0 (!%p195_p9), %vm369_vm0, %v271_v0  ;;  %1041 = vmatpush3.msk.msra.mxu1 (!%p195_p9), %vm369_vm0, %v271_v0  ;;  %s224_s14 = sand.u32 (!%p195_p9), 1, %s1135_s19   ;;  %s1541_s23 = scalar_lea.hbm (!%p195_p9), %s1588_s5, %s1224_s30 }
  0x10   : > { %s915_s15 = sshll.u32 (!%p195_p9), %s224_s14, 1  ;;  %s810_s24 = scalar_lea.sflag (!%p195_p9), [#allocation3], %s224_s14 }
  0x11   : > { %s226_s16 = scalar_lea.vmem (!%p195_p9), [#allocation2], %s915_s15  ;;  %s1145_s29 = smov (!%p195_p9), [#allocation2]  }
  0x12   : > { %s827_s17 = sshll.u32 (!%p195_p9), %s226_s16, 4  ;;  %s1543_s17 = int_to_ptr.vmem [resolvable:$true] %s827_s17 }
  0x13   : > { %s1081_s28 = scalar_lea.vmem (!%p195_p9), %s1543_s17, 32 }
  0x14   : > { %p1082_p11 = scmp.ne.s32.totalorder (!%p195_p9), %s1543_s17, %s1081_s28 }
  0x15   : > { %s1228_s6 = scalar_select %p228_p10, %s1224_s30, 63 }
  0x16   : > { %p1083_p12 = pnand %p1082_p11, %p1211_p5 }
  0x17   : > { %s917_s7 = sshll.u32 %s1228_s6, 3  ;;  %s1085_s6 = sshll.u32 %s1145_s29, 4  ;;  %s1086_s6 = int_to_ptr.vmem [resolvable:$false] %s1085_s6 }
  0x18   : > { %s1236_s10 = scalar_lea.vmem %s1583_s0, %s917_s7  ;;  %s1307_s13 = scalar_lea.vmem %s1587_s4, %s917_s7 }
  0x19   : > { %v239_v1 = vld [vmem:[%s1236_s10] sm:$0xff]  ;;  %v240_v2 = vld [vmem:[%s1236_s10 + $0x8] sm:$0xff]  ;;  %v241_v3 = vld [vmem:[%s1236_s10 + $0x10] sm:$0xff]  ;;  %p1084_p13 = pneg %p1083_p12  ;;  %s1087_s7 = scalar_lea.vmem %s1086_s6, 64 }
  0x1a   : > { %992 = vmatprep.mubr.msk.f32.mxu0 %vm272_vm1, %v239_v1  ;;  %v242_v4 = vld [vmem:[%s1236_s10 + $0x18] sm:$0xff]  ;;  %v243_v5 = vld [vmem:[%s1236_s10 + $0x20] sm:$0xff]  ;;  %v256_v7 = vld [vmem:[%s1236_s10 + $0x88] sm:$0xff]  ;;  %p1088_p0 = scmp.lt.s32.totalorder %s1543_s17, %s1086_s6  ;;  %p1089_p1 = scmp.lt.s32.totalorder %s1087_s7, %s1081_s28 }
  0x1b   : > { %993 = vmatmul.mubr.msk.f32.vlgmr.msra.gmra.mrb[0].mxu0 %vm272_vm1, %v240_v2  ;;  %v255_v6 = vld [vmem:[%s1236_s10 + $0x80] sm:$0xff]  ;;  %v257_v8 = vld [vmem:[%s1236_s10 + $0x90] sm:$0xff]  ;;  %v244_v9 = vld [vmem:[%s1236_s10 + $0x28] sm:$0xff] }
  0x1c   : > { %995 = vmatprep.mubr.msk.f32.mxu0 %vm272_vm1, %v241_v3  ;;  %1016 = vmatprep.mubr.msk.f32.mxu1 %vm272_vm1, %v255_v6  ;;  %v245_v10 = vld [vmem:[%s1236_s10 + $0x30] sm:$0xff]  ;;  %v258_v11 = vld [vmem:[%s1236_s10 + $0x98] sm:$0xff]  ;;  %v259_v12 = vld [vmem:[%s1236_s10 + $0xa0] sm:$0xff]  ;;  %p1090_p2 = por %p1089_p1, %p1088_p0 }
  0x1d   : > { %1017 = vmatmul.mubr.msk.f32.vlgmr.msra.gmra.mrb[0].mxu1 %vm272_vm1, %v256_v7  ;;  %v246_v13 = vld [vmem:[%s1236_s10 + $0x38] sm:$0xff]  ;;  %v247_v14 = vld [vmem:[%s1236_s10 + $0x40] sm:$0xff]  ;;  %v260_v15 = vld [vmem:[%s1236_s10 + $0xa8] sm:$0xff] }
  0x1e   : > { %1019 = vmatprep.mubr.msk.f32.mxu1 %vm272_vm1, %v257_v8  ;;  %v261_v16 = vld [vmem:[%s1236_s10 + $0xb0] sm:$0xff]  ;;  %v248_v17 = vld [vmem:[%s1236_s10 + $0x48] sm:$0xff]  ;;  %v262_v19 = vld [vmem:[%s1236_s10 + $0xb8] sm:$0xff]  ;;  %p1091_p3 = pnand %p1090_p2, %p1084_p13 }
  0x1f   : > { %996 = vmatmul.mubr.msk.f32.gmra.mrb[2].mxu0 %vm272_vm1, %v242_v4  ;;  %v249_v18 = vld [vmem:[%s1236_s10 + $0x50] sm:$0xff]  ;;  %v263_v20 = vld [vmem:[%s1236_s10 + $0xc0] sm:$0xff]  ;;  %v250_v21 = vld [vmem:[%s1236_s10 + $0x58] sm:$0xff] }
  0x20   : > { %998 = vmatprep.mubr.msk.f32.mxu0 %vm272_vm1, %v243_v5  ;;  %v251_v22 = vld [vmem:[%s1236_s10 + $0x60] sm:$0xff]  ;;  %v264_v23 = vld [vmem:[%s1236_s10 + $0xc8] sm:$0xff]  ;;  %v265_v24 = vld [vmem:[%s1236_s10 + $0xd0] sm:$0xff] }
  0x21   : > { %1020 = vmatmul.mubr.msk.f32.gmra.mrb[2].mxu1 %vm272_vm1, %v258_v11  ;;  %v252_v25 = vld [vmem:[%s1236_s10 + $0x68] sm:$0xff]  ;;  %v253_v26 = vld [vmem:[%s1236_s10 + $0x70] sm:$0xff]  ;;  %v266_v27 = vld [vmem:[%s1236_s10 + $0xd8] sm:$0xff] }
  0x22   : > { %1022 = vmatprep.mubr.msk.f32.mxu1 %vm272_vm1, %v259_v12  ;;  %v267_v28 = vld [vmem:[%s1236_s10 + $0xe0] sm:$0xff]  ;;  %v254_v29 = vld [vmem:[%s1236_s10 + $0x78] sm:$0xff]  ;;  %v268_v30 = vld [vmem:[%s1236_s10 + $0xe8] sm:$0xff] }
  0x23   : > { %999 = vmatmul.mubr.msk.f32.gmra.mrb[4].mxu0 %vm272_vm1, %v244_v9  ;;  %v269_v31 = vld [vmem:[%s1236_s10 + $0xf0] sm:$0xff]  ;;  %v270_v32 = vld [vmem:[%s1236_s10 + $0xf8] sm:$0xff] }
  0x24   : > { %1001 = vmatprep.mubr.msk.f32.mxu0 %vm272_vm1, %v245_v10 }
  0x25   : > { %1023 = vmatmul.mubr.msk.f32.gmra.mrb[4].mxu1 %vm272_vm1, %v260_v15 }
  0x26   : > { %1025 = vmatprep.mubr.msk.f32.mxu1 %vm272_vm1, %v261_v16 }
  0x27   : > { %1002 = vmatmul.mubr.msk.f32.gmra.mrb[6].mxu0 %vm272_vm1, %v246_v13 }
  0x28   : > { %1004 = vmatprep.mubr.msk.f32.mxu0 %vm272_vm1, %v247_v14 }
  0x29   : > { %1026 = vmatmul.mubr.msk.f32.gmra.mrb[6].mxu1 %vm272_vm1, %v262_v19 }
  0x2a   : > { %1028 = vmatprep.mubr.msk.f32.mxu1 %vm272_vm1, %v263_v20 }
  0x2b   : > { %1005 = vmatmul.mubr.msk.f32.gmra.mrb[8].mxu0 %vm272_vm1, %v248_v17 }
  0x2c   : > { %1007 = vmatprep.mubr.msk.f32.mxu0 %vm272_vm1, %v249_v18 }
  0x2d   : > { %1029 = vmatmul.mubr.msk.f32.gmra.mrb[8].mxu1 %vm272_vm1, %v264_v23 }
  0x2e   : > { %1031 = vmatprep.mubr.msk.f32.mxu1 %vm272_vm1, %v265_v24 }
  0x2f   : > { %1008 = vmatmul.mubr.msk.f32.gmra.mrb[10].mxu0 %vm272_vm1, %v250_v21 }
  0x30   : > { %1010 = vmatprep.mubr.msk.f32.mxu0 %vm272_vm1, %v251_v22 }
  0x31   : > { %1032 = vmatmul.mubr.msk.f32.gmra.mrb[10].mxu1 %vm272_vm1, %v266_v27 }
  0x32   : > { %1034 = vmatprep.mubr.msk.f32.mxu1 %vm272_vm1, %v267_v28 }
  0x33   : > { %1011 = vmatmul.mubr.msk.f32.gmra.mrb[12].mxu0 %vm272_vm1, %v252_v25 }
  0x34   : > { %1013 = vmatprep.mubr.msk.f32.mxu0 %vm272_vm1, %v253_v26 }
  0x35   : > { %1035 = vmatmul.mubr.msk.f32.gmra.mrb[12].mxu1 %vm272_vm1, %v268_v30 }
  0x36   : > { %1037 = vmatprep.mubr.msk.f32.mxu1 %vm272_vm1, %v269_v31 }
  0x37   : > { %1014 = vmatmul.mubr.msk.f32.gmra.mrb[14].mxu0 %vm272_vm1, %v254_v29 }
  0x39   : > { %1038 = vmatmul.mubr.msk.f32.gmra.mrb[14].mxu1 %vm272_vm1, %v270_v32 }
  0xee   : > { %v994_v33 = vpop.f32.mrb[0].mxu0 }
  0xef   : > { %600 = vst.msk [vmem:[%s1307_s13 + $0x8] sm:$0xff] %vm598_vm2, %v994_v33  ;;  %v632_v34 = vsel %vm598_vm2, %v994_v33, 0.0  ;;  %v703_v35 = vmul.f32 %v994_v33, %v994_v33  ;;  %v439_v36 = vpop.f32.mrb[1].mxu0 }
  0xf0   : > { %599 = vst.msk [vmem:[%s1307_s13] sm:$0xff] %vm598_vm2, %v439_v36  ;;  %v631_v37 = vsel %vm598_vm2, %v439_v36, 0.0  ;;  %v702_v38 = vmul.f32 %v439_v36, %v439_v36  ;;  %v1319_v45 = vpop.f32.mrb[0].mxu1 }
  0xf1   : > { %v735_v39 = vsel %vm598_vm2, %v703_v35, 0.0  ;;  %v633_v40 = vadd.f32 %v632_v34, %v631_v37  ;;  %616 = vst.msk [vmem:[%s1307_s13 + $0x88] sm:$0xff] %vm598_vm2, %v1319_v45  ;;  %v1327_v49 = vpop.f32.mrb[1].mxu1 }
  0xf2   : > { %v734_v41 = vsel %vm598_vm2, %v702_v38, 0.0  ;;  %v997_v42 = vpop.f32.mrb[2].mxu0  ;;  %615 = vst.msk [vmem:[%s1307_s13 + $0x80] sm:$0xff] %vm598_vm2, %v1327_v49 }
  0xf3   : > { %v736_v43 = vadd.f32 %v735_v39, %v734_v41  ;;  %602 = vst.msk [vmem:[%s1307_s13 + $0x18] sm:$0xff] %vm598_vm2, %v997_v42  ;;  %v449_v44 = vpop.f32.mrb[3].mxu0  ;;  %v705_v46 = vmul.f32 %v997_v42, %v997_v42  ;;  %v636_v51 = vsel %vm598_vm2, %v997_v42, 0.0 }
  0xf4   : > { %601 = vst.msk [vmem:[%s1307_s13 + $0x10] sm:$0xff] %vm598_vm2, %v449_v44  ;;  %v634_v47 = vsel %vm598_vm2, %v449_v44, 0.0  ;;  %v704_v48 = vmul.f32 %v449_v44, %v449_v44  ;;  %v1336_v57 = vpop.f32.mrb[2].mxu1 }
  0xf5   : > { %v635_v50 = vadd.f32 %v634_v47, %v633_v40  ;;  %v739_v58 = vsel %vm598_vm2, %v705_v46, 0.0  ;;  %618 = vst.msk [vmem:[%s1307_s13 + $0x98] sm:$0xff] %vm598_vm2, %v1336_v57  ;;  %v1345_v62 = vpop.f32.mrb[3].mxu1 }
  0xf6   : > { %v737_v52 = vsel %vm598_vm2, %v704_v48, 0.0  ;;  %v1000_v53 = vpop.f32.mrb[4].mxu0  ;;  %617 = vst.msk [vmem:[%s1307_s13 + $0x90] sm:$0xff] %vm598_vm2, %v1345_v62 }
  0xf7   : > { %v738_v54 = vadd.f32 %v737_v52, %v736_v43  ;;  %604 = vst.msk [vmem:[%s1307_s13 + $0x28] sm:$0xff] %vm598_vm2, %v1000_v53  ;;  %v459_v55 = vpop.f32.mrb[5].mxu0  ;;  %v637_v56 = vadd.f32 %v636_v51, %v635_v50  ;;  %v707_v59 = vmul.f32 %v1000_v53, %v1000_v53  ;;  %v640_v1 = vsel %vm598_vm2, %v1000_v53, 0.0 }
  0xf8   : > { %603 = vst.msk [vmem:[%s1307_s13 + $0x20] sm:$0xff] %vm598_vm2, %v459_v55  ;;  %v638_v60 = vsel %vm598_vm2, %v459_v55, 0.0  ;;  %v706_v61 = vmul.f32 %v459_v55, %v459_v55  ;;  %v1354_v7 = vpop.f32.mrb[4].mxu1 }
  0xf9   : > { %v639_v63 = vadd.f32 %v638_v60, %v637_v56  ;;  %v740_v0 = vadd.f32 %v739_v58, %v738_v54  ;;  %v743_v8 = vsel %vm598_vm2, %v707_v59, 0.0  ;;  %620 = vst.msk [vmem:[%s1307_s13 + $0xa8] sm:$0xff] %vm598_vm2, %v1354_v7  ;;  %v1363_v12 = vpop.f32.mrb[5].mxu1 }
  0xfa   : > { %v741_v2 = vsel %vm598_vm2, %v706_v61, 0.0  ;;  %v1003_v3 = vpop.f32.mrb[6].mxu0  ;;  %619 = vst.msk [vmem:[%s1307_s13 + $0xa0] sm:$0xff] %vm598_vm2, %v1363_v12 }
  0xfb   : > { %v742_v4 = vadd.f32 %v741_v2, %v740_v0  ;;  %606 = vst.msk [vmem:[%s1307_s13 + $0x38] sm:$0xff] %vm598_vm2, %v1003_v3  ;;  %v469_v5 = vpop.f32.mrb[7].mxu0  ;;  %v641_v6 = vadd.f32 %v640_v1, %v639_v63  ;;  %v709_v9 = vmul.f32 %v1003_v3, %v1003_v3  ;;  %v644_v15 = vsel %vm598_vm2, %v1003_v3, 0.0 }
  0xfc   : > { %605 = vst.msk [vmem:[%s1307_s13 + $0x30] sm:$0xff] %vm598_vm2, %v469_v5  ;;  %v642_v10 = vsel %vm598_vm2, %v469_v5, 0.0  ;;  %v708_v11 = vmul.f32 %v469_v5, %v469_v5  ;;  %v1372_v21 = vpop.f32.mrb[6].mxu1  ;;  %v718_v3 = vmul.f32 %v1327_v49, %v1327_v49 }
  0xfd   : > { %v643_v13 = vadd.f32 %v642_v10, %v641_v6  ;;  %v744_v14 = vadd.f32 %v743_v8, %v742_v4  ;;  %v747_v22 = vsel %vm598_vm2, %v709_v9, 0.0  ;;  %622 = vst.msk [vmem:[%s1307_s13 + $0xb8] sm:$0xff] %vm598_vm2, %v1372_v21  ;;  %v1381_v26 = vpop.f32.mrb[7].mxu1 }
  0xfe   : > { %v745_v16 = vsel %vm598_vm2, %v708_v11, 0.0  ;;  %v1006_v17 = vpop.f32.mrb[8].mxu0  ;;  %621 = vst.msk [vmem:[%s1307_s13 + $0xb0] sm:$0xff] %vm598_vm2, %v1381_v26 }
  0xff   : > { %v746_v18 = vadd.f32 %v745_v16, %v744_v14  ;;  %608 = vst.msk [vmem:[%s1307_s13 + $0x48] sm:$0xff] %vm598_vm2, %v1006_v17  ;;  %v479_v19 = vpop.f32.mrb[9].mxu0  ;;  %v645_v20 = vadd.f32 %v644_v15, %v643_v13  ;;  %v711_v23 = vmul.f32 %v1006_v17, %v1006_v17  ;;  %v648_v29 = vsel %vm598_vm2, %v1006_v17, 0.0 }
 0x100   : > { %607 = vst.msk [vmem:[%s1307_s13 + $0x40] sm:$0xff] %vm598_vm2, %v479_v19  ;;  %v646_v24 = vsel %vm598_vm2, %v479_v19, 0.0  ;;  %v710_v25 = vmul.f32 %v479_v19, %v479_v19  ;;  %v1390_v35 = vpop.f32.mrb[8].mxu1  ;;  %v662_v16 = vsel %vm598_vm2, %v1327_v49, 0.0  ;;  %v719_v19 = vmul.f32 %v1319_v45, %v1319_v45 }
 0x101   : > { %v647_v27 = vadd.f32 %v646_v24, %v645_v20  ;;  %v748_v28 = vadd.f32 %v747_v22, %v746_v18  ;;  %v751_v36 = vsel %vm598_vm2, %v711_v23, 0.0  ;;  %624 = vst.msk [vmem:[%s1307_s13 + $0xc8] sm:$0xff] %vm598_vm2, %v1390_v35  ;;  %v1399_v40 = vpop.f32.mrb[9].mxu1  ;;  %v765_v23 = vsel %vm598_vm2, %v718_v3, 0.0 }
 0x102   : > { %v749_v30 = vsel %vm598_vm2, %v710_v25, 0.0  ;;  %v1009_v31 = vpop.f32.mrb[10].mxu0  ;;  %623 = vst.msk [vmem:[%s1307_s13 + $0xc0] sm:$0xff] %vm598_vm2, %v1399_v40  ;;  %v720_v24 = vmul.f32 %v1345_v62, %v1345_v62  ;;  %v727_v3 = vmul.f32 %v1390_v35, %v1390_v35 }
 0x103   : > { %v750_v32 = vadd.f32 %v749_v30, %v748_v28  ;;  %610 = vst.msk [vmem:[%s1307_s13 + $0x58] sm:$0xff] %vm598_vm2, %v1009_v31  ;;  %v489_v33 = vpop.f32.mrb[11].mxu0  ;;  %v649_v34 = vadd.f32 %v648_v29, %v647_v27  ;;  %v713_v37 = vmul.f32 %v1009_v31, %v1009_v31  ;;  %v652_v43 = vsel %vm598_vm2, %v1009_v31, 0.0 }
 0x104   : > { %609 = vst.msk [vmem:[%s1307_s13 + $0x50] sm:$0xff] %vm598_vm2, %v489_v33  ;;  %v650_v38 = vsel %vm598_vm2, %v489_v33, 0.0  ;;  %v712_v39 = vmul.f32 %v489_v33, %v489_v33  ;;  %v1408_v51 = vpop.f32.mrb[10].mxu1  ;;  %v664_v29 = vsel %vm598_vm2, %v1319_v45, 0.0  ;;  %v666_v30 = vsel %vm598_vm2, %v1345_v62, 0.0 }
 0x105   : > { %v651_v41 = vadd.f32 %v650_v38, %v649_v34  ;;  %v752_v42 = vadd.f32 %v751_v36, %v750_v32  ;;  %v755_v52 = vsel %vm598_vm2, %v713_v37, 0.0  ;;  %626 = vst.msk [vmem:[%s1307_s13 + $0xd8] sm:$0xff] %vm598_vm2, %v1408_v51  ;;  %v1417_v56 = vpop.f32.mrb[11].mxu1  ;;  %v767_v34 = vsel %vm598_vm2, %v719_v19, 0.0 }
 0x106   : > { %v753_v44 = vsel %vm598_vm2, %v712_v39, 0.0  ;;  %v1012_v46 = vpop.f32.mrb[12].mxu0  ;;  %625 = vst.msk [vmem:[%s1307_s13 + $0xd0] sm:$0xff] %vm598_vm2, %v1417_v56  ;;  %v721_v36 = vmul.f32 %v1336_v57, %v1336_v57  ;;  %v769_v37 = vsel %vm598_vm2, %v720_v24, 0.0  ;;  %v722_v38 = vmul.f32 %v1363_v12, %v1363_v12 }
 0x107   : > { %v754_v47 = vadd.f32 %v753_v44, %v752_v42  ;;  %612 = vst.msk [vmem:[%s1307_s13 + $0x68] sm:$0xff] %vm598_vm2, %v1012_v46  ;;  %v499_v48 = vpop.f32.mrb[13].mxu0  ;;  %v653_v50 = vadd.f32 %v652_v43, %v651_v41  ;;  %v715_v53 = vmul.f32 %v1012_v46, %v1012_v46  ;;  %v656_v60 = vsel %vm598_vm2, %v1012_v46, 0.0 }
 0x108   : > { %611 = vst.msk [vmem:[%s1307_s13 + $0x60] sm:$0xff] %vm598_vm2, %v499_v48  ;;  %v654_v54 = vsel %vm598_vm2, %v499_v48, 0.0  ;;  %v714_v55 = vmul.f32 %v499_v48, %v499_v48  ;;  %v1428_v4 = vpop.f32.mrb[12].mxu1  ;;  %v668_v62 = vsel %vm598_vm2, %v1336_v57, 0.0  ;;  %v670_v41 = vsel %vm598_vm2, %v1363_v12, 0.0 }
 0x109   : > { %v655_v58 = vadd.f32 %v654_v54, %v653_v50  ;;  %v756_v59 = vadd.f32 %v755_v52, %v754_v47  ;;  %v759_v5 = vsel %vm598_vm2, %v715_v53, 0.0  ;;  %628 = vst.msk [vmem:[%s1307_s13 + $0xe8] sm:$0xff] %vm598_vm2, %v1428_v4  ;;  %v1437_v10 = vpop.f32.mrb[13].mxu1  ;;  %v771_v44 = vsel %vm598_vm2, %v721_v36, 0.0 }
 0x10a   : > { %v757_v61 = vsel %vm598_vm2, %v714_v55, 0.0  ;;  %v1015_v63 = vpop.f32.mrb[14].mxu0  ;;  %627 = vst.msk [vmem:[%s1307_s13 + $0xe0] sm:$0xff] %vm598_vm2, %v1437_v10  ;;  %v723_v46 = vmul.f32 %v1354_v7, %v1354_v7  ;;  %v773_v47 = vsel %vm598_vm2, %v722_v38, 0.0  ;;  %v724_v48 = vmul.f32 %v1381_v26, %v1381_v26 }
 0x10b   : > { %v758_v0 = vadd.f32 %v757_v61, %v756_v59  ;;  %614 = vst.msk [vmem:[%s1307_s13 + $0x78] sm:$0xff] %vm598_vm2, %v1015_v63  ;;  %v509_v1 = vpop.f32.mrb[15].mxu0  ;;  %v657_v2 = vadd.f32 %v656_v60, %v655_v58  ;;  %v717_v6 = vmul.f32 %v1015_v63, %v1015_v63  ;;  %v660_v14 = vsel %vm598_vm2, %v1015_v63, 0.0 }
 0x10c   : > { %613 = vst.msk [vmem:[%s1307_s13 + $0x70] sm:$0xff] %vm598_vm2, %v509_v1  ;;  %v658_v8 = vsel %vm598_vm2, %v509_v1, 0.0  ;;  %v716_v9 = vmul.f32 %v509_v1, %v509_v1  ;;  %v1448_v20 = vpop.f32.mrb[14].mxu1  ;;  %v672_v57 = vsel %vm598_vm2, %v1354_v7, 0.0  ;;  %v674_v12 = vsel %vm598_vm2, %v1381_v26, 0.0 }
 0x10d   : > { %v659_v11 = vadd.f32 %v658_v8, %v657_v2  ;;  %v760_v13 = vadd.f32 %v759_v5, %v758_v0  ;;  %v763_v22 = vsel %vm598_vm2, %v717_v6, 0.0  ;;  %630 = vst.msk [vmem:[%s1307_s13 + $0xf8] sm:$0xff] %vm598_vm2, %v1448_v20  ;;  %v733_v49 = vmul.f32 %v1448_v20, %v1448_v20  ;;  %v1459_v25 = vpop.f32.mrb[15].mxu1 }
 0x10e   : > { %v761_v15 = vsel %vm598_vm2, %v716_v9, 0.0  ;;  %629 = vst.msk [vmem:[%s1307_s13 + $0xf0] sm:$0xff] %vm598_vm2, %v1459_v25  ;;  %v775_v55 = vsel %vm598_vm2, %v723_v46, 0.0  ;;  %v725_v58 = vmul.f32 %v1372_v21, %v1372_v21  ;;  %v777_v59 = vsel %vm598_vm2, %v724_v48, 0.0 }
 0x10f   : > { %v661_v17 = vadd.f32 %v660_v14, %v659_v11  ;;  %v762_v18 = vadd.f32 %v761_v15, %v760_v13  ;;  %v1469_v31 = vsel %vm598_vm2, %v733_v49, 0.0  ;;  %v726_v60 = vmul.f32 %v1399_v40, %v1399_v40 }
 0x110   : > { %v676_v7 = vsel %vm598_vm2, %v1372_v21, 0.0  ;;  %v678_v26 = vsel %vm598_vm2, %v1399_v40, 0.0  ;;  %v779_v2 = vsel %vm598_vm2, %v725_v58, 0.0  ;;  %v728_v6 = vmul.f32 %v1417_v56, %v1417_v56 }
 0x111   : > { %v764_v27 = vadd.f32 %v763_v22, %v762_v18  ;;  %v663_v28 = vadd.f32 %v662_v16, %v661_v17  ;;  %v781_v5 = vsel %vm598_vm2, %v726_v60, 0.0  ;;  %v680_v21 = vsel %vm598_vm2, %v1390_v35, 0.0 }
 0x112   : > { %v682_v40 = vsel %vm598_vm2, %v1417_v56, 0.0  ;;  %v783_v14 = vsel %vm598_vm2, %v727_v3, 0.0  ;;  %v729_v15 = vmul.f32 %v1408_v51, %v1408_v51  ;;  %v785_v16 = vsel %vm598_vm2, %v728_v6, 0.0 }
 0x113   : > { %v766_v32 = vadd.f32 %v765_v23, %v764_v27  ;;  %v665_v33 = vadd.f32 %v664_v29, %v663_v28  ;;  %v730_v17 = vmul.f32 %v1437_v10, %v1437_v10  ;;  %v684_v35 = vsel %vm598_vm2, %v1408_v51, 0.0 }
 0x114   : > { %v686_v56 = vsel %vm598_vm2, %v1437_v10, 0.0  ;;  %v787_v24 = vsel %vm598_vm2, %v729_v15, 0.0  ;;  %v731_v49 = vmul.f32 %v1428_v4, %v1428_v4  ;;  %v732_v28 = vmul.f32 %v1459_v25, %v1459_v25 }
 0x115   : > { %v667_v39 = vadd.f32 %v666_v30, %v665_v33  ;;  %v768_v45 = vadd.f32 %v767_v34, %v766_v32  ;;  %v789_v27 = vsel %vm598_vm2, %v730_v17, 0.0  ;;  %v688_v51 = vsel %vm598_vm2, %v1428_v4, 0.0 }
 0x116   : > { %v690_v10 = vsel %vm598_vm2, %v1459_v25, 0.0  ;;  %v791_v34 = vsel %vm598_vm2, %v731_v49, 0.0  ;;  %v793_v36 = vsel %vm598_vm2, %v732_v28, 0.0 }
 0x117   : > { %v770_v42 = vadd.f32 %v769_v37, %v768_v45  ;;  %v669_v43 = vadd.f32 %v668_v62, %v667_v39  ;;  %v692_v39 = vsel %vm598_vm2, %v1448_v20, 0.0 }
 0x119   : > { %v671_v50 = vadd.f32 %v670_v41, %v669_v43  ;;  %v772_v52 = vadd.f32 %v771_v44, %v770_v42 }
 0x11b   : > { %v774_v53 = vadd.f32 %v773_v47, %v772_v52  ;;  %v673_v54 = vadd.f32 %v672_v57, %v671_v50 }
 0x11d   : > { %v675_v61 = vadd.f32 %v674_v12, %v673_v54  ;;  %v776_v63 = vadd.f32 %v775_v55, %v774_v53 }
 0x11f   : > { %v778_v0 = vadd.f32 %v777_v59, %v776_v63  ;;  %v677_v1 = vadd.f32 %v676_v7, %v675_v61 }
 0x121   : > { %v679_v8 = vadd.f32 %v678_v26, %v677_v1  ;;  %v780_v9 = vadd.f32 %v779_v2, %v778_v0 }
 0x123   : > { %v782_v11 = vadd.f32 %v781_v5, %v780_v9  ;;  %v681_v13 = vadd.f32 %v680_v21, %v679_v8 }
 0x125   : > { %v683_v18 = vadd.f32 %v682_v40, %v681_v13  ;;  %v784_v19 = vadd.f32 %v783_v14, %v782_v11 }
 0x127   : > { %v786_v22 = vadd.f32 %v785_v16, %v784_v19  ;;  %v685_v23 = vadd.f32 %v684_v35, %v683_v18 }
 0x129   : > { %v687_v29 = vadd.f32 %v686_v56, %v685_v23  ;;  %v788_v30 = vadd.f32 %v787_v24, %v786_v22 }
 0x12b   : > { %v790_v32 = vadd.f32 %v789_v27, %v788_v30  ;;  %v689_v33 = vadd.f32 %v688_v51, %v687_v29 }
 0x12d   : > { %v691_v37 = vadd.f32 %v690_v10, %v689_v33  ;;  %v792_v38 = vadd.f32 %v791_v34, %v790_v32 }
 0x12f   : > { %v693_v45 = vadd.f32 %v692_v39, %v691_v37  ;;  %v794_v62 = vadd.f32 %v793_v36, %v792_v38 }
 0x131   : > { %v694_v41 = vrot.slane %v693_v45, 4  ;;  %v796_v42 = vadd.f32 %v1469_v31, %v794_v62 }
 0x133   : > { %v695_v4 = vadd.f32 %v694_v41, %v693_v45  ;;  %v797_v25 = vrot.slane %v796_v42, 4 }
 0x135   : > { %v696_v43 = vrot.slane %v695_v4, 2  ;;  %v798_v44 = vadd.f32 %v797_v25, %v796_v42 }
 0x137   : > { %v697_v46 = vadd.f32 %v696_v43, %v695_v4  ;;  %v799_v47 = vrot.slane %v798_v44, 2 }
 0x139   : > { %v698_v48 = vrot.slane %v697_v46, 1  ;;  %v800_v50 = vadd.f32 %v799_v47, %v798_v44 }
 0x13b   : > { %v699_v20 = vadd.f32 %v698_v48, %v697_v46  ;;  %v801_v52 = vrot.slane %v800_v50, 1 }
 0x13d   : > { %701 = vst.msk [vmem:[%s226_s16] sm:$0x1] %vm700_vm3, %v699_v20  ;;  %v802_v57 = vadd.f32 %v801_v52, %v800_v50 }
 0x13f   : > { %803 = vst.msk [vmem:[%s226_s16 + $0x1] sm:$0x1] %vm700_vm3, %v802_v57 }
 0x140   : > { %1094 = shalt.err (!%p1091_p3)
}
 0x141   : > { %s1095_s30 = scalar_lea.hbm %s1541_s23, 32  ;;  %s1099_s10 = scalar_lea.hbm %s1588_s5, 64 }
 0x142   : > { %p1096_p4 = scmp.ne.s32.totalorder %s1541_s23, %s1095_s30  ;;  %p1100_p9 = scmp.lt.u32.totalorder %s1541_s23, %s1588_s5 }
 0x143   : > { %p1101_p10 = scmp.lt.u32.totalorder %s1099_s10, %s1095_s30  ;;  %p1103_p12 = scmp.lt.u32.totalorder %s1095_s30, %s1541_s23 }
 0x144   : > { %p1097_p7 = pnand %p1096_p4, %p1211_p5 }
 0x145   : > { %p1102_p11 = por %p1101_p10, %p1100_p9 }
 0x146   : > { %p1098_p8 = pneg %p1097_p7 }
 0x147   : > { %p1104_p13 = por %p1103_p12, %p1102_p11 }
 0x149   : > { %p1105_p0 = pnand %p1104_p13, %p1098_p8 }
 0x14b   : > { %1108 = shalt.err (!%p1105_p0)
}
 0x14c   : > { %1042 = dma.vmem_to_hbm [thread:$0]  (%p1211_p5), %s1543_s17, 32, %s1541_s23, %s810_s24  }
 0x14d PF: > { %p1048_p1 = scmp.ge.s32.totalorder %s1143_s21, 2  ;;  %s847_s13 = sand.u32 1, %s1131_s18  }
 0x14e   : > { %s848_s14 = scalar_lea.sflag [#allocation3], %s847_s13 }
 0x14f   : > { %p1045_p2 = pnand %p1048_p1, %p1215_p6 }
 0x151   : > { %1126 = dma.done.wait (!%p1045_p2), %s848_s14, 32  }
 0x152   : > { %1128 = vsyncadd (!%p1045_p2), %s848_s14, 4294967264  ;;  %p16_p3 = scmp.ge.s32.totalorder %s1199_s22, 4   ;;  %s1591_s18 = smov %s1135_s19 }
 0x153   : > { %s1592_s19 = smov %s1139_s20  ;;  %s1593_s20 = smov %s1209_s25 }
 0x154   : > { %s1594_s21 = smov %s1199_s22  ;;  %18 = sbr.rel (!%p16_p3) target bundleno = 3 (0x3), region = 83 }
 0x15b   :  { %853 = vsyncpa [#allocation3], 1 }
 0x15c   :  { %855 = vsyncpa [#allocation3 + $0x1], 1 }

</bundles_post_ra>
